<compile_context>
chip_gen: v7x
topology: tpu7x:2x2x1
jax: 0.10.0
libtpu: 0.0.40
codegen_flags: <defaults>
</compile_context>

<pallas_src>
import math

import jax
import jax.numpy as jnp
from jax.experimental import pallas as pl
from jax.experimental.pallas import tpu as pltpu


PREFERRED_TB = 512   # sweet spot from tiling sweeps (512-1024 ~= roofline)
K_PAD = 16           # input features padded 10 -> 16 for clean bf16 packing


def _round_up(n, m):
    return ((n + m - 1) // m) * m


def _choose_tile(batch, preferred=PREFERRED_TB):
    """Pick the batch tile: as big as `preferred`, but no bigger than the
    (128-rounded) batch, and split so there are >= 2 grid steps when the batch
    allows it (v7x has 2 TensorCores; a single tile leaves one idle)."""
    bp = _round_up(max(batch, 1), 128)
    tb = min(preferred, bp)
    if tb == bp and bp >= 256:
        tb = _round_up(bp // 2, 128)
    return tb


def _mlp_kernel(x_ref,
                w1_ref, b1_ref,
                w2_ref, b2_ref,
                w3_ref, b3_ref,
                w4_ref, b4_ref,
                o_ref):
    """relu(fc1) -> [dropout: identity in eval] -> relu(fc2) -> relu(fc3) -> fc4.

    Layers 1-3 run on the MXU with bf16 operands / f32 accumulation; layer 4
    (64 -> 1) runs on the VPU + XLU and is stored as a lane-dense [1, TB] row.
    """
    x = x_ref[...]  # [TB, 16] bf16 (features zero-padded 10 -> 16)

    h1 = jnp.dot(x, w1_ref[...], preferred_element_type=jnp.float32) + b1_ref[...]
    h1 = jnp.maximum(h1, 0.0).astype(jnp.bfloat16)          # [TB, 256]
    # TODO(synk): nn.Dropout(0.3) is identity at inference; training-mode dropout
    # (random mask + 1/(1-p) scale) is intentionally not emitted here.

    h2 = jnp.dot(h1, w2_ref[...], preferred_element_type=jnp.float32) + b2_ref[...]
    h2 = jnp.maximum(h2, 0.0).astype(jnp.bfloat16)          # [TB, 128]

    h3 = jnp.dot(h2, w3_ref[...], preferred_element_type=jnp.float32) + b3_ref[...]
    h3 = jnp.maximum(h3, 0.0)                               # [TB, 64] f32

    # Final 64 -> 1 layer on the VPU/XLU: transpose to [64, TB] (XLU slot has
    # slack), multiply by the weight column and reduce over sublanes. The
    # result is already a lane-dense [1, TB] row -> unmasked stores.
    h3t = h3.T                                              # [64, TB]
    y = jnp.sum(h3t * w4_ref[...], axis=0, keepdims=True) + b4_ref[...]  # [1, TB]
    o_ref[...] = y.reshape(o_ref.shape)                     # [1, 1, TB]


def prepare_params(params):
    """One-time conversion of PyTorch-layout params ([out,in] weights, [out]
    biases) to the kernel layout. Called once, outside the per-call path."""
    w1 = params["w1"].T.astype(jnp.bfloat16)                # [10, 256]
    w1 = jnp.pad(w1, ((0, K_PAD - w1.shape[0]), (0, 0)))    # [16, 256]
    return {
        "w1": w1,                                            # [16, 256] bf16
        "w2": params["w2"].T.astype(jnp.bfloat16),           # [256, 128] bf16
        "w3": params["w3"].T.astype(jnp.bfloat16),           # [128, 64]  bf16
        "w4": params["w4"].T.astype(jnp.float32),             # [64, 1] col (VPU layer)
        "b1": params["b1"].reshape(1, -1).astype(jnp.float32),
        "b2": params["b2"].reshape(1, -1).astype(jnp.float32),
        "b3": params["b3"].reshape(1, -1).astype(jnp.float32),
        "b4": params["b4"].reshape(1, 1).astype(jnp.float32),
    }


def hypermind_forward(x, kp):
    """x: [B, 10] float32.  kp: output of prepare_params()."""
    B = x.shape[0]
    TB = _choose_tile(B)
    n_tiles = pl.cdiv(B, TB)
    Bp = n_tiles * TB

    xb = x.astype(jnp.bfloat16)
    xb = jnp.pad(xb, ((0, Bp - B), (0, K_PAD - xb.shape[1])))  # [Bp, 16]

    # Weights/biases: full-extent blocks with a constant index_map -> they are
    # DMA'd once and stay VMEM-resident across all batch-grid steps.
    resident = lambda a: pl.BlockSpec(a.shape, lambda i: (0,) * a.ndim)

    flops = 2 * Bp * (K_PAD * 256 + 256 * 128 + 128 * 64 + 64)
    bytes_accessed = (Bp * K_PAD * 2                              # x (bf16)
                      + (K_PAD * 256 + 256 * 128 + 128 * 64) * 2  # bf16 weights
                      + (64 + 256 + 128 + 64 + 1) * 4             # w4 col + biases
                      + Bp * 4)                                   # output (f32)

    cp_kwargs = dict(dimension_semantics=("parallel",))
    if TB >= 2048:
        # Insurance when tile-sweeping: cover f32 h1 [TB,256] + double-buffered
        # x/out blocks (still far under physical VMEM on v5e/v6e/v7x).
        cp_kwargs["vmem_limit_bytes"] = 48 * 1024 * 1024

    out = pl.pallas_call(
        _mlp_kernel,
        out_shape=jax.ShapeDtypeStruct((n_tiles, 1, TB), jnp.float32),
        grid=(n_tiles,),
        in_specs=[pl.BlockSpec((TB, K_PAD), lambda i: (i, 0)),
                  resident(kp["w1"]), resident(kp["b1"]),
                  resident(kp["w2"]), resident(kp["b2"]),
                  resident(kp["w3"]), resident(kp["b3"]),
                  resident(kp["w4"]), resident(kp["b4"])],
        out_specs=pl.BlockSpec((1, 1, TB), lambda i: (i, 0, 0)),
        compiler_params=pltpu.CompilerParams(**cp_kwargs),
        cost_estimate=pl.CostEstimate(flops=flops, transcendentals=0,
                                      bytes_accessed=bytes_accessed),
    )(xb,
      kp["w1"], kp["b1"],
      kp["w2"], kp["b2"],
      kp["w3"], kp["b3"],
      kp["w4"], kp["b4"])

    # (n_tiles, 1, TB) -> (Bp, 1) -> (B, 1)
    return out.reshape(Bp, 1)[:B]


def init_params(key):
    """PyTorch-default-style init: U(-1/sqrt(fan_in), 1/sqrt(fan_in)) for
    weights ([out, in]) and biases ([out])."""
    sizes = [(256, 10), (128, 256), (64, 128), (1, 64)]
    params = {}
    for i, (out_f, in_f) in enumerate(sizes, start=1):
        key, kw, kb = jax.random.split(key, 3)
        bound = 1.0 / math.sqrt(in_f)
        params[f"w{i}"] = jax.random.uniform(
            kw, (out_f, in_f), jnp.float32, minval=-bound, maxval=bound)
        params[f"b{i}"] = jax.random.uniform(
            kb, (out_f,), jnp.float32, minval=-bound, maxval=bound)
    return params


def _reference_forward(x, params):
    """Pure-JAX reference mirroring the kernel's bf16-in / f32-accumulate
    datapath exactly (bf16 rounding of x, w1..w3 and of h1, h2)."""
    f32 = lambda a: a.astype(jnp.bfloat16).astype(jnp.float32)
    h1 = jnp.maximum(f32(x) @ f32(params["w1"]).T + params["b1"], 0.0)
    h2 = jnp.maximum(f32(h1) @ f32(params["w2"]).T + params["b2"], 0.0)
    h3 = jnp.maximum(f32(h2) @ f32(params["w3"]).T + params["b3"], 0.0)
    return h3 @ params["w4"].T + params["b4"]


if __name__ == "__main__":
    key = jax.random.PRNGKey(0)
    key, kx1, kx2 = jax.random.split(key, 3)

    params = init_params(key)
    kernel_params = prepare_params(params)  # one-time layout/dtype prep

    # Small demo batch (feature dim fixed at 10 by the module).
    B = 8
    x = jax.random.normal(kx1, (B, 10), jnp.float32)
    out = jax.block_until_ready(hypermind_forward(x, kernel_params))
    ref = _reference_forward(x, params)
    assert out.shape == (B, 1), out.shape
    assert jnp.allclose(out, ref, atol=1e-3, rtol=1e-3), "mismatch vs JAX reference"

    # Secondary check: multi-tile / lane-dense writeback path (n_tiles >= 2).
    B2 = 200
    x2 = jax.random.normal(kx2, (B2, 10), jnp.float32)
    out2 = jax.block_until_ready(hypermind_forward(x2, kernel_params))
    ref2 = _reference_forward(x2, params)
    assert out2.shape == (B2, 1), out2.shape
    assert jnp.allclose(out2, ref2, atol=1e-3, rtol=1e-3), "multi-tile mismatch"

    print("KERNEL_OK")
</pallas_src>

<mosaic_0001>
module attributes {stable_mosaic.version = 11 : i64} {
  func.func @_mlp_kernel(%arg0: i32, %arg1: memref<128x16xbf16, #tpu.memory_space<vmem>>, %arg2: memref<16x256xbf16, #tpu.memory_space<vmem>>, %arg3: memref<1x256xf32, #tpu.memory_space<vmem>>, %arg4: memref<256x128xbf16, #tpu.memory_space<vmem>>, %arg5: memref<1x128xf32, #tpu.memory_space<vmem>>, %arg6: memref<128x64xbf16, #tpu.memory_space<vmem>>, %arg7: memref<1x64xf32, #tpu.memory_space<vmem>>, %arg8: memref<64x1xf32, #tpu.memory_space<vmem>>, %arg9: memref<1x1xf32, #tpu.memory_space<vmem>>, %arg10: memref<1x1x128xf32, #tpu.memory_space<vmem>>) attributes {dimension_semantics = [#tpu.dimension_semantics<parallel>], iteration_bounds = array<i64: 1>, scalar_prefetch = 0 : i64, scratch_operands = 0 : i64, tpu.core_type = #tpu.core_type<tc>, window_params = [{transform_indices = @transform_0, window_bounds = array<i64: 128, 16>}, {pipeline_mode = #tpu.pipeline_mode<synchronous>, transform_indices = @transform_1, window_bounds = array<i64: 16, 256>}, {pipeline_mode = #tpu.pipeline_mode<synchronous>, transform_indices = @transform_2, window_bounds = array<i64: 1, 256>}, {pipeline_mode = #tpu.pipeline_mode<synchronous>, transform_indices = @transform_3, window_bounds = array<i64: 256, 128>}, {pipeline_mode = #tpu.pipeline_mode<synchronous>, transform_indices = @transform_4, window_bounds = array<i64: 1, 128>}, {pipeline_mode = #tpu.pipeline_mode<synchronous>, transform_indices = @transform_5, window_bounds = array<i64: 128, 64>}, {pipeline_mode = #tpu.pipeline_mode<synchronous>, transform_indices = @transform_6, window_bounds = array<i64: 1, 64>}, {pipeline_mode = #tpu.pipeline_mode<synchronous>, transform_indices = @transform_7, window_bounds = array<i64: 64, 1>}, {pipeline_mode = #tpu.pipeline_mode<synchronous>, transform_indices = @transform_8, window_bounds = array<i64: 1, 1>}, {transform_indices = @transform_9, window_bounds = array<i64: 1, 1, 128>}]} {
    %c0 = arith.constant 0 : index
    %c0_0 = arith.constant 0 : index
    %0 = vector.load %arg1[%c0, %c0_0] : memref<128x16xbf16, #tpu.memory_space<vmem>>, vector<128x16xbf16>
    %c0_1 = arith.constant 0 : index
    %c0_2 = arith.constant 0 : index
    %1 = vector.load %arg2[%c0_1, %c0_2] : memref<16x256xbf16, #tpu.memory_space<vmem>>, vector<16x256xbf16>
    %cst = arith.constant dense<0.000000e+00> : vector<128x256xf32>
    %2 = tpu.matmul %0, %1, %cst {dimension_numbers = #tpu.dot_dimension_numbers<[1], [0], [0], [1], [0, 0, 1, 1], [], []>} : vector<128x16xbf16>, vector<16x256xbf16>, vector<128x256xf32> -> vector<128x256xf32>
    %c0_3 = arith.constant 0 : index
    %c0_4 = arith.constant 0 : index
    %3 = vector.load %arg3[%c0_3, %c0_4] : memref<1x256xf32, #tpu.memory_space<vmem>>, vector<1x256xf32>
    %4 = vector.broadcast %3 : vector<1x256xf32> to vector<128x256xf32>
    %5 = arith.addf %2, %4 : vector<128x256xf32>
    %cst_5 = arith.constant 0.000000e+00 : f32
    %6 = vector.broadcast %cst_5 : f32 to vector<128x256xf32>
    %7 = arith.maximumf %5, %6 : vector<128x256xf32>
    %8 = arith.truncf %7 : vector<128x256xf32> to vector<128x256xbf16>
    %c0_6 = arith.constant 0 : index
    %c0_7 = arith.constant 0 : index
    %9 = vector.load %arg4[%c0_6, %c0_7] : memref<256x128xbf16, #tpu.memory_space<vmem>>, vector<256x128xbf16>
    %cst_8 = arith.constant dense<0.000000e+00> : vector<128x128xf32>
    %10 = tpu.matmul %8, %9, %cst_8 {dimension_numbers = #tpu.dot_dimension_numbers<[1], [0], [0], [1], [0, 0, 1, 1], [], []>} : vector<128x256xbf16>, vector<256x128xbf16>, vector<128x128xf32> -> vector<128x128xf32>
    %c0_9 = arith.constant 0 : index
    %c0_10 = arith.constant 0 : index
    %11 = vector.load %arg5[%c0_9, %c0_10] : memref<1x128xf32, #tpu.memory_space<vmem>>, vector<1x128xf32>
    %12 = vector.broadcast %11 : vector<1x128xf32> to vector<128x128xf32>
    %13 = arith.addf %10, %12 : vector<128x128xf32>
    %cst_11 = arith.constant 0.000000e+00 : f32
    %14 = vector.broadcast %cst_11 : f32 to vector<128x128xf32>
    %15 = arith.maximumf %13, %14 : vector<128x128xf32>
    %16 = arith.truncf %15 : vector<128x128xf32> to vector<128x128xbf16>
    %c0_12 = arith.constant 0 : index
    %c0_13 = arith.constant 0 : index
    %17 = vector.load %arg6[%c0_12, %c0_13] : memref<128x64xbf16, #tpu.memory_space<vmem>>, vector<128x64xbf16>
    %cst_14 = arith.constant dense<0.000000e+00> : vector<128x64xf32>
    %18 = tpu.matmul %16, %17, %cst_14 {dimension_numbers = #tpu.dot_dimension_numbers<[1], [0], [0], [1], [0, 0, 1, 1], [], []>} : vector<128x128xbf16>, vector<128x64xbf16>, vector<128x64xf32> -> vector<128x64xf32>
    %c0_15 = arith.constant 0 : index
    %c0_16 = arith.constant 0 : index
    %19 = vector.load %arg7[%c0_15, %c0_16] : memref<1x64xf32, #tpu.memory_space<vmem>>, vector<1x64xf32>
    %20 = vector.broadcast %19 : vector<1x64xf32> to vector<128x64xf32>
    %21 = arith.addf %18, %20 : vector<128x64xf32>
    %cst_17 = arith.constant 0.000000e+00 : f32
    %22 = vector.broadcast %cst_17 : f32 to vector<128x64xf32>
    %23 = arith.maximumf %21, %22 : vector<128x64xf32>
    %24 = tpu.transpose %23, [1, 0] : vector<128x64xf32> -> vector<64x128xf32>
    %c0_18 = arith.constant 0 : index
    %c0_19 = arith.constant 0 : index
    %25 = vector.load %arg8[%c0_18, %c0_19] : memref<64x1xf32, #tpu.memory_space<vmem>>, vector<64x1xf32>
    %26 = vector.broadcast %25 : vector<64x1xf32> to vector<64x128xf32>
    %27 = arith.mulf %24, %26 : vector<64x128xf32>
    %cst_20 = arith.constant dense<0.000000e+00> : vector<128xf32>
    %28 = vector.multi_reduction <add>, %27, %cst_20 [0] : vector<64x128xf32> to vector<128xf32>
    %29 = vector.shape_cast %28 : vector<128xf32> to vector<1x128xf32>
    %c0_21 = arith.constant 0 : index
    %c0_22 = arith.constant 0 : index
    %30 = vector.load %arg9[%c0_21, %c0_22] : memref<1x1xf32, #tpu.memory_space<vmem>>, vector<1x1xf32>
    %31 = vector.broadcast %30 : vector<1x1xf32> to vector<1x128xf32>
    %32 = arith.addf %29, %31 : vector<1x128xf32>
    %33 = vector.shape_cast %32 : vector<1x128xf32> to vector<1x1x128xf32>
    %c0_23 = arith.constant 0 : index
    %c0_24 = arith.constant 0 : index
    %c0_25 = arith.constant 0 : index
    %34 = vector.load %arg10[%c0_23, %c0_24, %c0_25] : memref<1x1x128xf32, #tpu.memory_space<vmem>>, vector<1x1x128xf32>
    tpu.vector_store %arg10[%c0_23, %c0_24, %c0_25], %33 {strides = array<i32>} : memref<1x1x128xf32, #tpu.memory_space<vmem>>, vector<1x1x128xf32>,
    return
  }
  func.func @transform_0(%arg0: i32) -> (i32, i32) {
    %c0_i32 = arith.constant 0 : i32
    %c0_i32_0 = arith.constant 0 : i32
    return %arg0, %c0_i32 : i32, i32
  }
  func.func @transform_1(%arg0: i32) -> (i32, i32) {
    %c0_i32 = arith.constant 0 : i32
    %c0_i32_0 = arith.constant 0 : i32
    %c0_i32_1 = arith.constant 0 : i32
    return %c0_i32, %c0_i32_0 : i32, i32
  }
  func.func @transform_2(%arg0: i32) -> (i32, i32) {
    %c0_i32 = arith.constant 0 : i32
    %c0_i32_0 = arith.constant 0 : i32
    %c0_i32_1 = arith.constant 0 : i32
    return %c0_i32, %c0_i32_0 : i32, i32
  }
  func.func @transform_3(%arg0: i32) -> (i32, i32) {
    %c0_i32 = arith.constant 0 : i32
    %c0_i32_0 = arith.constant 0 : i32
    %c0_i32_1 = arith.constant 0 : i32
    return %c0_i32, %c0_i32_0 : i32, i32
  }
  func.func @transform_4(%arg0: i32) -> (i32, i32) {
    %c0_i32 = arith.constant 0 : i32
    %c0_i32_0 = arith.constant 0 : i32
    %c0_i32_1 = arith.constant 0 : i32
    return %c0_i32, %c0_i32_0 : i32, i32
  }
  func.func @transform_5(%arg0: i32) -> (i32, i32) {
    %c0_i32 = arith.constant 0 : i32
    %c0_i32_0 = arith.constant 0 : i32
    %c0_i32_1 = arith.constant 0 : i32
    return %c0_i32, %c0_i32_0 : i32, i32
  }
  func.func @transform_6(%arg0: i32) -> (i32, i32) {
    %c0_i32 = arith.constant 0 : i32
    %c0_i32_0 = arith.constant 0 : i32
    %c0_i32_1 = arith.constant 0 : i32
    return %c0_i32, %c0_i32_0 : i32, i32
  }
  func.func @transform_7(%arg0: i32) -> (i32, i32) {
    %c0_i32 = arith.constant 0 : i32
    %c0_i32_0 = arith.constant 0 : i32
    %c0_i32_1 = arith.constant 0 : i32
    return %c0_i32, %c0_i32_0 : i32, i32
  }
  func.func @transform_8(%arg0: i32) -> (i32, i32) {
    %c0_i32 = arith.constant 0 : i32
    %c0_i32_0 = arith.constant 0 : i32
    %c0_i32_1 = arith.constant 0 : i32
    return %c0_i32, %c0_i32_0 : i32, i32
  }
  func.func @transform_9(%arg0: i32) -> (i32, i32, i32) {
    %c0_i32 = arith.constant 0 : i32
    %c0_i32_0 = arith.constant 0 : i32
    %c0_i32_1 = arith.constant 0 : i32
    return %arg0, %c0_i32, %c0_i32_0 : i32, i32, i32
  }
}

</mosaic_0001>

<bundles_post_ra>
// kernel: tpu_custom_call.1
= control target key start
LH: loop header
LB: loop body
LE: loop exit
PB: predicated region body
PF: predicated region fallthrough
CT: control target
= control target key end

     0   :  { %s1360_s0 = inlined_call_operand.vmem [shape: bf16[128,16], index: 0, kind: input, shape index: {}]   ;;  %s1361_s1 = inlined_call_operand.vmem [shape: bf16[16,256], index: 1, kind: input, shape index: {}]   ;;  %s1362_s2 = inlined_call_operand.vmem [shape: f32[1,256], index: 2, kind: input, shape index: {}]   ;;  %s1363_s3 = inlined_call_operand.vmem [shape: bf16[256,128], index: 3, kind: input, shape index: {}]   ;;  %s1364_s4 = inlined_call_operand.vmem [shape: f32[1,128], index: 4, kind: input, shape index: {}]   ;;  %s1365_s5 = inlined_call_operand.vmem [shape: bf16[128,64], index: 5, kind: input, shape index: {}]   ;;  %s1366_s6 = inlined_call_operand.vmem [shape: f32[1,64], index: 6, kind: input, shape index: {}]   ;;  %s1367_s7 = inlined_call_operand.vmem [shape: f32[64,1], index: 7, kind: input, shape index: {}]   ;;  %s1368_s8 = inlined_call_operand.<no memory space> [shape: f32[1,1], index: 8, kind: input, shape index: {}]   ;;  %s1369_s9 = inlined_call_operand.hbm [shape: f32[1,1,128], index: 9, kind: output, shape index: {}]  }
   0x1   :  { %v14_v0 = vstv %s1368_s8 }
   0x2   :  { %15 = vst [vmem:[#allocation2] sm:$0x1] %v14_v0 }
   0x3   :  { %v1029_v1 = vld [vmem:[%s1361_s1 + $0x4] ss:$8 sps:$4 sm:$0xff]   ;;  %v1031_v2 = vld [vmem:[%s1361_s1] ss:$8 sps:$4 sm:$0xff]   ;;  %v1088_v3 = vmov 0   ;;  %vm116_vm0 = vcmask 130048  }
   0x4   :  { %173 = vmatprep.mubr.bf16.mxu0 %v1088_v3  ;;  %1028 = vset.pattern.permute.xlu1 %v1088_v3  ;;  %v1032_v4 = vld [vmem:[%s1360_s0] sm:$0xff]   ;;  %v1033_v5 = vld [vmem:[%s1360_s0 + $0x8] sm:$0xff]   ;;  %v1044_v10 = vld [vmem:[%s1363_s3 + $0x50] sm:$0xff]  }
   0x5   :  { %141 = vmatprep.subr.bf16.mxu0 %v1029_v1  ;;  %1027 = vset.pattern.permute.xlu0 %v1088_v3  ;;  %v1040_v6 = vld [vmem:[%s1363_s3 + $0x40] sm:$0xff]   ;;  %v1042_v8 = vld [vmem:[%s1363_s3 + $0x48] sm:$0xff]   ;;  %v1034_v11 = vld [vmem:[%s1360_s0 + $0x10] sm:$0xff]  }
   0x6   :  { %142 = vmatpush1.bf16.msra.mxu0 %v1031_v2  ;;  %v1041_v7 = vld [vmem:[%s1363_s3] sm:$0xff]   ;;  %913 = vmatprep.subr.bf16.mxu1 %v1040_v6  ;;  %v1043_v9 = vld [vmem:[%s1363_s3 + $0x8] sm:$0xff]   ;;  %v1045_v12 = vld [vmem:[%s1363_s3 + $0x10] sm:$0xff]  }
   0x7   :  { %914 = vmatpush3.bf16.msra.mxu1 %v1041_v7  ;;  %v1046_v13 = vld [vmem:[%s1363_s3 + $0x58] sm:$0xff]   ;;  %v1048_v15 = vld [vmem:[%s1363_s3 + $0x60] sm:$0xff]   ;;  %v1050_v18 = vld [vmem:[%s1363_s3 + $0x68] sm:$0xff]  }
   0x8   :  { %915 = vmatprep.subr.bf16.mxu1 %v1042_v8  ;;  %v1047_v14 = vld [vmem:[%s1363_s3 + $0x18] sm:$0xff]   ;;  %v1049_v16 = vld [vmem:[%s1363_s3 + $0x20] sm:$0xff]  }
   0x9   :  { %879 = vmatmul.mubr.msk.bf16.vlgmr.msra.gmra.mrb[0].mxu0 %vm116_vm0, %v1032_v4  ;;  %v1035_v17 = vld [vmem:[%s1360_s0 + $0x18] sm:$0xff]  }
   0xa   :  { %183 = vmatprep.mubr.bf16.mxu0 %v1088_v3 }
   0xb   :  { %916 = vmatpush3.bf16.msra.mxu1 %v1043_v9 }
   0xc   :  { %917 = vmatprep.subr.bf16.mxu1 %v1044_v10 }
   0xf   :  { %918 = vmatpush3.bf16.msra.mxu1 %v1045_v12 }
  0x10   :  { %919 = vmatprep.subr.bf16.mxu1 %v1046_v13 }
  0x11   :  { %880 = vmatmul.mubr.msk.bf16.gmra.mrb[4].mxu0 %vm116_vm0, %v1033_v5 }
  0x12   :  { %193 = vmatprep.mubr.bf16.mxu0 %v1088_v3 }
  0x13   :  { %920 = vmatpush3.bf16.msra.mxu1 %v1047_v14 }
  0x14   :  { %921 = vmatprep.subr.bf16.mxu1 %v1048_v15 }
  0x17   :  { %922 = vmatpush3.bf16.msra.mxu1 %v1049_v16 }
  0x19   :  { %881 = vmatmul.mubr.msk.bf16.gmra.mrb[8].mxu0 %vm116_vm0, %v1034_v11 }
  0x1a   :  { %203 = vmatprep.mubr.bf16.mxu0 %v1088_v3 }
  0x1b   :  { %16 = vsyncpa [#allocation4], 0  ;;  %923 = vmatprep.subr.bf16.mxu1 %v1050_v18  ;;  %v1036_v19 = vld [vmem:[%s1360_s0 + $0x20] sm:$0xff]   ;;  %v1037_v20 = vld [vmem:[%s1360_s0 + $0x28] sm:$0xff]   ;;  %v56_v34 = vlaneseq }
  0x1c   :  { %v1038_v21 = vld [vmem:[%s1360_s0 + $0x30] sm:$0xff]   ;;  %v1039_v22 = vld [vmem:[%s1360_s0 + $0x38] sm:$0xff]   ;;  %v1051_v23 = vld [vmem:[%s1363_s3 + $0x28] sm:$0xff]  }
  0x1d   :  { %924 = vmatpush3.bf16.msra.mxu1 %v1051_v23  ;;  %v1052_v24 = vld [vmem:[%s1363_s3 + $0x70] sm:$0xff]   ;;  %v1054_v26 = vld [vmem:[%s1363_s3 + $0x78] sm:$0xff]   ;;  %v1056_v28 = vld [vmem:[%s1365_s5] sm:$0xff]   ;;  %v1247_v35 = vshrl.u32 %v56_v34, 7 }
  0x1e   :  { %v1053_v25 = vld [vmem:[%s1363_s3 + $0x30] sm:$0xff]   ;;  %925 = vmatprep.subr.bf16.mxu1 %v1052_v24  ;;  %v1055_v27 = vld [vmem:[%s1363_s3 + $0x38] sm:$0xff]   ;;  %v1057_v29 = vld [vmem:[%s1365_s5 + $0x8] sm:$0xff]   ;;  %993 = vmatprep.subr.bf16.mxu0 %v1056_v28 }
  0x1f   :  { %994 = vmatpush3.bf16.msra.mxu0 %v1056_v28  ;;  %v1058_v30 = vld [vmem:[%s1365_s5 + $0x10] sm:$0xff]   ;;  %v1059_v31 = vld [vmem:[%s1365_s5 + $0x18] sm:$0xff]   ;;  %v1060_v32 = vld [vmem:[%s1365_s5 + $0x20] sm:$0xff]   ;;  %v58_v36 = vsub.s32 0, %v1247_v35  ;;  %v62_v38 = vsub.s32 1, %v1247_v35 }
  0x20   :  { %995 = vmatprep.subr.bf16.mxu0 %v1057_v29  ;;  %v1061_v33 = vld [vmem:[%s1365_s5 + $0x28] sm:$0xff]   ;;  %v54_v37 = vld [vmem:[%s1362_s2] sm:$0x3] }
  0x21   :  { %882 = vmatmul.mubr.msk.bf16.gmra.mrb[12].mxu0 %vm116_vm0, %v1035_v17  ;;  %926 = vmatpush3.bf16.msra.mxu1 %v1053_v25  ;;  %v1256_v39 = vrot.slane %v54_v37, %v58_v36  ;;  %v1258_v40 = vrot.slane %v54_v37, %v62_v38 }
  0x22   :  { %213 = vmatprep.mubr.bf16.mxu0 %v1088_v3  ;;  %927 = vmatprep.subr.bf16.mxu1 %v1054_v26 }
  0x23   :  { %996 = vmatpush3.bf16.msra.mxu0 %v1057_v29 }
  0x24   :  { %997 = vmatprep.subr.bf16.mxu0 %v1058_v30 }
  0x25   :  { %928 = vmatpush3.bf16.msra.mxu1 %v1055_v27 }
  0x27   :  { %998 = vmatpush3.bf16.msra.mxu0 %v1058_v30 }
  0x28   :  { %999 = vmatprep.subr.bf16.mxu0 %v1059_v31 }
  0x29   :  { %883 = vmatmul.mubr.msk.bf16.gmra.mrb[16].mxu0 %vm116_vm0, %v1036_v19 }
  0x2a   :  { %223 = vmatprep.mubr.bf16.mxu0 %v1088_v3 }
  0x2b   :  { %1000 = vmatpush3.bf16.msra.mxu0 %v1059_v31 }
  0x2c   :  { %1001 = vmatprep.subr.bf16.mxu0 %v1060_v32 }
  0x2f   :  { %1002 = vmatpush3.bf16.msra.mxu0 %v1060_v32 }
  0x30   :  { %1003 = vmatprep.subr.bf16.mxu0 %v1061_v33 }
  0x31   :  { %884 = vmatmul.mubr.msk.bf16.gmra.mrb[20].mxu0 %vm116_vm0, %v1037_v20 }
  0x32   :  { %233 = vmatprep.mubr.bf16.mxu0 %v1088_v3 }
  0x33   :  { %1004 = vmatpush3.bf16.msra.mxu0 %v1061_v33 }
  0x39   :  { %885 = vmatmul.mubr.msk.bf16.gmra.mrb[24].mxu0 %vm116_vm0, %v1038_v21 }
  0x3a   :  { %243 = vmatprep.mubr.bf16.mxu0 %v1088_v3 }
  0x41   :  { %886 = vmatmul.mubr.msk.bf16.gmra.mrb[28].mxu0 %vm116_vm0, %v1039_v22 }
  0xdc   :  { %v175_v41 = vpop.f32.mrb[0].mxu0 }
  0xdd   :  { %v176_v42 = vadd.f32 %v175_v41, %v1256_v39  ;;  %v177_v43 = vpop.f32.mrb[1].mxu0 }
  0xde   :  { %v178_v44 = vadd.f32 %v177_v43, %v1258_v40  ;;  %v179_v45 = vpop.f32.mrb[2].mxu0 }
  0xdf   :  { %v180_v46 = vadd.f32 %v179_v45, %v1256_v39  ;;  %v181_v47 = vpop.f32.mrb[3].mxu0  ;;  %v254_v49 = vmax.f32 %v176_v42, 0.0 }
  0xe0   :  { %v182_v48 = vadd.f32 %v181_v47, %v1258_v40  ;;  %v255_v51 = vmax.f32 %v178_v44, 0.0 }
  0xe1   :  { %v256_v50 = vmax.f32 %v180_v46, 0.0 }
  0xe2   :  { %v257_v52 = vmax.f32 %v182_v48, 0.0 }
  0xe3   :  { %v286_v53 = vpack.c.bf16 %v256_v50, %v254_v49 }
  0xe4   :  { %v185_v54 = vpop.f32.mrb[4].mxu0  ;;  %v287_v55 = vpack.c.bf16 %v257_v52, %v255_v51 }
  0xe5   :  { %v186_v56 = vadd.f32 %v185_v54, %v1256_v39  ;;  %v187_v57 = vpop.f32.mrb[5].mxu0 }
  0xe6   :  { %v188_v58 = vadd.f32 %v187_v57, %v1258_v40  ;;  %v189_v59 = vpop.f32.mrb[6].mxu0  ;;  %469 = vmatprep.mubr.bf16.mxu1 %v287_v55 }
  0xe7   :  { %v190_v60 = vadd.f32 %v189_v59, %v1256_v39  ;;  %v191_v61 = vpop.f32.mrb[7].mxu0  ;;  %470 = vmatmul.mubr.bf16.vlgmr.msra.gmra.mrb[0].mxu1 %v286_v53  ;;  %v258_v63 = vmax.f32 %v186_v56, 0.0 }
  0xe8   :  { %v192_v62 = vadd.f32 %v191_v61, %v1258_v40  ;;  %v259_v1 = vmax.f32 %v188_v58, 0.0 }
  0xe9   :  { %v260_v0 = vmax.f32 %v190_v60, 0.0 }
  0xea   :  { %v261_v2 = vmax.f32 %v192_v62, 0.0 }
  0xeb   :  { %v288_v3 = vpack.c.bf16 %v260_v0, %v258_v63 }
  0xec   :  { %v289_v4 = vpack.c.bf16 %v261_v2, %v259_v1  ;;  %v195_v5 = vpop.f32.mrb[8].mxu0 }
  0xed   :  { %v196_v6 = vadd.f32 %v195_v5, %v1256_v39  ;;  %v197_v7 = vpop.f32.mrb[9].mxu0 }
  0xee   :  { %v198_v8 = vadd.f32 %v197_v7, %v1258_v40  ;;  %v199_v9 = vpop.f32.mrb[10].mxu0  ;;  %477 = vmatprep.mubr.bf16.mxu1 %v289_v4 }
  0xef   :  { %v200_v10 = vadd.f32 %v199_v9, %v1256_v39  ;;  %v201_v11 = vpop.f32.mrb[11].mxu0  ;;  %478 = vmatmul.mubr.bf16.gmra.mrb[4].mxu1 %v288_v3  ;;  %v262_v13 = vmax.f32 %v196_v6, 0.0 }
  0xf0   :  { %v202_v12 = vadd.f32 %v201_v11, %v1258_v40  ;;  %v263_v15 = vmax.f32 %v198_v8, 0.0 }
  0xf1   :  { %v264_v14 = vmax.f32 %v200_v10, 0.0 }
  0xf2   :  { %v265_v16 = vmax.f32 %v202_v12, 0.0 }
  0xf3   :  { %v290_v17 = vpack.c.bf16 %v264_v14, %v262_v13 }
  0xf4   :  { %v291_v18 = vpack.c.bf16 %v265_v16, %v263_v15  ;;  %v205_v19 = vpop.f32.mrb[12].mxu0 }
  0xf5   :  { %v206_v20 = vadd.f32 %v205_v19, %v1256_v39  ;;  %v207_v21 = vpop.f32.mrb[13].mxu0 }
  0xf6   :  { %v208_v22 = vadd.f32 %v207_v21, %v1258_v40  ;;  %v209_v23 = vpop.f32.mrb[14].mxu0  ;;  %485 = vmatprep.mubr.bf16.mxu1 %v291_v18 }
  0xf7   :  { %v210_v24 = vadd.f32 %v209_v23, %v1256_v39  ;;  %v211_v25 = vpop.f32.mrb[15].mxu0  ;;  %486 = vmatmul.mubr.bf16.gmra.mrb[8].mxu1 %v290_v17  ;;  %v266_v27 = vmax.f32 %v206_v20, 0.0 }
  0xf8   :  { %v212_v26 = vadd.f32 %v211_v25, %v1258_v40  ;;  %v267_v29 = vmax.f32 %v208_v22, 0.0 }
  0xf9   :  { %v268_v28 = vmax.f32 %v210_v24, 0.0 }
  0xfa   :  { %v269_v30 = vmax.f32 %v212_v26, 0.0 }
  0xfb   :  { %v292_v31 = vpack.c.bf16 %v268_v28, %v266_v27 }
  0xfc   :  { %v293_v32 = vpack.c.bf16 %v269_v30, %v267_v29  ;;  %v215_v33 = vpop.f32.mrb[16].mxu0  ;;  %v1062_v29 = vld [vmem:[%s1365_s5 + $0x30] sm:$0xff]   ;;  %v777_v30 = vld [vmem:[%s1367_s7 + $0x18] sm:$0xff] }
  0xfd   :  { %v216_v34 = vadd.f32 %v215_v33, %v1256_v39  ;;  %v217_v37 = vpop.f32.mrb[17].mxu0  ;;  %1005 = vmatprep.subr.bf16.mxu0 %v1062_v29 }
  0xfe   :  { %v218_v38 = vadd.f32 %v217_v37, %v1258_v40  ;;  %v219_v41 = vpop.f32.mrb[18].mxu0  ;;  %493 = vmatprep.mubr.bf16.mxu1 %v293_v32  ;;  %1006 = vmatpush3.bf16.msra.mxu0 %v1062_v29  ;;  %v781_v32 = vld [vmem:[%s1367_s7 + $0x38] sm:$0xff] }
  0xff   :  { %v220_v42 = vadd.f32 %v219_v41, %v1256_v39  ;;  %v221_v43 = vpop.f32.mrb[19].mxu0  ;;  %494 = vmatmul.mubr.bf16.gmra.mrb[12].mxu1 %v292_v31  ;;  %v270_v45 = vmax.f32 %v216_v34, 0.0  ;;  %v779_v31 = vld [vmem:[%s1367_s7 + $0x28] sm:$0xff]  ;;  %v1313_v34 = vld [vmem:[%s1364_s4] ss:$0 sm:$0xff] }
 0x100   :  { %v222_v44 = vadd.f32 %v221_v43, %v1258_v40  ;;  %v271_v47 = vmax.f32 %v218_v38, 0.0 }
 0x101   :  { %v272_v46 = vmax.f32 %v220_v42, 0.0 }
 0x102   :  { %v273_v48 = vmax.f32 %v222_v44, 0.0 }
 0x103   :  { %v294_v49 = vpack.c.bf16 %v272_v46, %v270_v45 }
 0x104   :  { %v295_v50 = vpack.c.bf16 %v273_v48, %v271_v47  ;;  %v225_v51 = vpop.f32.mrb[20].mxu0 }
 0x105   :  { %v226_v52 = vadd.f32 %v225_v51, %v1256_v39  ;;  %v227_v53 = vpop.f32.mrb[21].mxu0 }
 0x106   :  { %v228_v54 = vadd.f32 %v227_v53, %v1258_v40  ;;  %v229_v55 = vpop.f32.mrb[22].mxu0  ;;  %501 = vmatprep.mubr.bf16.mxu1 %v295_v50 }
 0x107   :  { %v230_v56 = vadd.f32 %v229_v55, %v1256_v39  ;;  %v231_v57 = vpop.f32.mrb[23].mxu0  ;;  %502 = vmatmul.mubr.bf16.gmra.mrb[16].mxu1 %v294_v49  ;;  %v274_v59 = vmax.f32 %v226_v52, 0.0 }
 0x108   :  { %v232_v58 = vadd.f32 %v231_v57, %v1258_v40  ;;  %v275_v61 = vmax.f32 %v228_v54, 0.0 }
 0x109   :  { %v276_v60 = vmax.f32 %v230_v56, 0.0 }
 0x10a   :  { %v277_v62 = vmax.f32 %v232_v58, 0.0 }
 0x10b   :  { %v296_v63 = vpack.c.bf16 %v276_v60, %v274_v59 }
 0x10c   :  { %v297_v0 = vpack.c.bf16 %v277_v62, %v275_v61  ;;  %v235_v1 = vpop.f32.mrb[24].mxu0 }
 0x10d   :  { %v236_v2 = vadd.f32 %v235_v1, %v1256_v39  ;;  %v237_v3 = vpop.f32.mrb[25].mxu0 }
 0x10e   :  { %v238_v4 = vadd.f32 %v237_v3, %v1258_v40  ;;  %v239_v5 = vpop.f32.mrb[26].mxu0  ;;  %509 = vmatprep.mubr.bf16.mxu1 %v297_v0 }
 0x10f   :  { %v240_v6 = vadd.f32 %v239_v5, %v1256_v39  ;;  %v241_v7 = vpop.f32.mrb[27].mxu0  ;;  %510 = vmatmul.mubr.bf16.gmra.mrb[20].mxu1 %v296_v63  ;;  %v278_v9 = vmax.f32 %v236_v2, 0.0 }
 0x110   :  { %v242_v8 = vadd.f32 %v241_v7, %v1258_v40  ;;  %v279_v11 = vmax.f32 %v238_v4, 0.0 }
 0x111   :  { %v280_v10 = vmax.f32 %v240_v6, 0.0 }
 0x112   :  { %v281_v12 = vmax.f32 %v242_v8, 0.0 }
 0x113   :  { %v298_v13 = vpack.c.bf16 %v280_v10, %v278_v9 }
 0x114   :  { %v299_v14 = vpack.c.bf16 %v281_v12, %v279_v11  ;;  %v245_v15 = vpop.f32.mrb[28].mxu0 }
 0x115   :  { %v246_v16 = vadd.f32 %v245_v15, %v1256_v39  ;;  %v247_v17 = vpop.f32.mrb[29].mxu0 }
 0x116   :  { %v248_v18 = vadd.f32 %v247_v17, %v1258_v40  ;;  %v249_v19 = vpop.f32.mrb[30].mxu0  ;;  %517 = vmatprep.mubr.bf16.mxu1 %v299_v14 }
 0x117   :  { %v250_v20 = vadd.f32 %v249_v19, %v1256_v39  ;;  %v251_v21 = vpop.f32.mrb[31].mxu0  ;;  %518 = vmatmul.mubr.bf16.gmra.mrb[24].mxu1 %v298_v13  ;;  %v282_v23 = vmax.f32 %v246_v16, 0.0  ;;  %v1063_v39 = vld [vmem:[%s1365_s5 + $0x38] sm:$0xff]  }
 0x118   :  { %v252_v22 = vadd.f32 %v251_v21, %v1258_v40  ;;  %v283_v25 = vmax.f32 %v248_v18, 0.0  ;;  %1007 = vmatprep.subr.bf16.mxu0 %v1063_v39  ;;  %v776_v40 = vld [vmem:[%s1367_s7 + $0x10] sm:$0xff] }
 0x119   :  { %v284_v24 = vmax.f32 %v250_v20, 0.0  ;;  %1008 = vmatpush3.bf16.msra.mxu0 %v1063_v39  ;;  %794 = vperm.xlu1 %1028, %v776_v40  }
 0x11a   :  { %v285_v26 = vmax.f32 %v252_v22, 0.0 }
 0x11b   :  { %v300_v27 = vpack.c.bf16 %v284_v24, %v282_v23 }
 0x11c   :  { %v301_v28 = vpack.c.bf16 %v285_v26, %v283_v25 }
 0x11d   :  { %799 = vperm.xlu1 %1028, %v777_v30  }
 0x11e   :  { %525 = vmatprep.mubr.bf16.mxu1 %v301_v28 }
 0x11f   :  { %526 = vmatmul.mubr.bf16.gmra.mrb[28].mxu1 %v300_v27 }
 0x121   :  { %809 = vperm.xlu1 %1028, %v779_v31  }
 0x125   :  { %819 = vperm.xlu1 %1028, %v781_v32  }
 0x1ba   :  { %v929_v33 = vpop.f32.mrb[0].mxu1 }
 0x1bb   :  { %v930_v37 = vpop.f32.mrb[1].mxu1 }
 0x1bc   :  { %v931_v38 = vadd.f32 %v930_v37, %v929_v33  ;;  %v932_v41 = vpop.f32.mrb[2].mxu1 }
 0x1bd   :  { %v933_v42 = vpop.f32.mrb[3].mxu1 }
 0x1be   :  { %v472_v43 = vadd.f32 %v931_v38, %v1313_v34  ;;  %v934_v44 = vadd.f32 %v933_v42, %v932_v41 }
 0x1c0   :  { %v475_v45 = vadd.f32 %v934_v44, %v1313_v34  ;;  %v534_v46 = vmax.f32 %v472_v43, 0.0 }
 0x1c2   :  { %v535_v47 = vmax.f32 %v475_v45, 0.0  ;;  %v935_v48 = vpop.f32.mrb[4].mxu1 }
 0x1c3   :  { %v936_v49 = vpop.f32.mrb[5].mxu1 }
 0x1c4   :  { %v937_v50 = vadd.f32 %v936_v49, %v935_v48  ;;  %v938_v51 = vpop.f32.mrb[6].mxu1  ;;  %v550_v52 = vpack.c.bf16 %v535_v47, %v534_v46 }
 0x1c5   :  { %v939_v53 = vpop.f32.mrb[7].mxu1 }
 0x1c6   :  { %v480_v54 = vadd.f32 %v937_v50, %v1313_v34  ;;  %v940_v55 = vadd.f32 %v939_v53, %v938_v51  ;;  %1009 = vmatprep.mubr.bf16.mxu0 %v550_v52 }
 0x1c8   :  { %v483_v56 = vadd.f32 %v940_v55, %v1313_v34  ;;  %v536_v57 = vmax.f32 %v480_v54, 0.0 }
 0x1ca   :  { %v537_v58 = vmax.f32 %v483_v56, 0.0  ;;  %v941_v59 = vpop.f32.mrb[8].mxu1 }
 0x1cb   :  { %v942_v60 = vpop.f32.mrb[9].mxu1 }
 0x1cc   :  { %v551_v61 = vpack.c.bf16 %v537_v58, %v536_v57  ;;  %v943_v62 = vadd.f32 %v942_v60, %v941_v59  ;;  %v944_v63 = vpop.f32.mrb[10].mxu1 }
 0x1cd   :  { %v945_v0 = vpop.f32.mrb[11].mxu1 }
 0x1ce   :  { %v488_v1 = vadd.f32 %v943_v62, %v1313_v34  ;;  %v946_v2 = vadd.f32 %v945_v0, %v944_v63  ;;  %1010 = vmatmul.mubr.bf16.vlgmr.msra.gmra.mrb[32].mxu0 %v551_v61 }
 0x1d0   :  { %v491_v3 = vadd.f32 %v946_v2, %v1313_v34  ;;  %v538_v4 = vmax.f32 %v488_v1, 0.0  ;;  %v774_v1 = vld [vmem:[%s1367_s7] sm:$0xff]  ;;  %v775_v2 = vld [vmem:[%s1367_s7 + $0x8] sm:$0xff] }
 0x1d1   :  { %784 = vperm.xlu0 %1027, %v774_v1  }
 0x1d2   :  { %v539_v5 = vmax.f32 %v491_v3, 0.0  ;;  %v947_v6 = vpop.f32.mrb[12].mxu1  ;;  %v778_v3 = vld [vmem:[%s1367_s7 + $0x20] sm:$0xff] }
 0x1d3   :  { %v948_v7 = vpop.f32.mrb[13].mxu1 }
 0x1d4   :  { %v949_v8 = vadd.f32 %v948_v7, %v947_v6  ;;  %v950_v9 = vpop.f32.mrb[14].mxu1  ;;  %v552_v10 = vpack.c.bf16 %v539_v5, %v538_v4  ;;  %v843_v4 = vld [vmem:[#allocation2] sm:$0x1] }
 0x1d5   :  { %v951_v11 = vpop.f32.mrb[15].mxu1  ;;  %789 = vperm.xlu0 %1027, %v775_v2   ;;  %v904_v5 = vld [vmem:[%s1366_s6] ss:$0 sm:$0xff]  ;;  %s1089_s6 = smov [#allocation3]  }
 0x1d6   :  { %v496_v12 = vadd.f32 %v949_v8, %v1313_v34  ;;  %v952_v13 = vadd.f32 %v951_v11, %v950_v9  ;;  %1013 = vmatprep.mubr.bf16.mxu0 %v552_v10 }
 0x1d8   :  { %v499_v14 = vadd.f32 %v952_v13, %v1313_v34  ;;  %v540_v15 = vmax.f32 %v496_v12, 0.0 }
 0x1d9   :  { %804 = vperm.xlu0 %1027, %v778_v3  }
 0x1da   :  { %v541_v16 = vmax.f32 %v499_v14, 0.0  ;;  %v953_v17 = vpop.f32.mrb[16].mxu1 }
 0x1db   :  { %v954_v18 = vpop.f32.mrb[17].mxu1 }
 0x1dc   :  { %v955_v19 = vadd.f32 %v954_v18, %v953_v17  ;;  %v956_v20 = vpop.f32.mrb[18].mxu1  ;;  %v553_v21 = vpack.c.bf16 %v541_v16, %v540_v15 }
 0x1dd   :  { %v957_v22 = vpop.f32.mrb[19].mxu1 }
 0x1de   :  { %v504_v23 = vadd.f32 %v955_v19, %v1313_v34  ;;  %v958_v24 = vadd.f32 %v957_v22, %v956_v20  ;;  %1014 = vmatmul.mubr.bf16.gmra.mrb[36].mxu0 %v553_v21 }
 0x1e0   :  { %v507_v25 = vadd.f32 %v958_v24, %v1313_v34  ;;  %v542_v26 = vmax.f32 %v504_v23, 0.0 }
 0x1e2   :  { %v543_v27 = vmax.f32 %v507_v25, 0.0  ;;  %v959_v28 = vpop.f32.mrb[20].mxu1 }
 0x1e3   :  { %v960_v29 = vpop.f32.mrb[21].mxu1 }
 0x1e4   :  { %v961_v39 = vadd.f32 %v960_v29, %v959_v28  ;;  %v962_v40 = vpop.f32.mrb[22].mxu1  ;;  %v554_v30 = vpack.c.bf16 %v543_v27, %v542_v26 }
 0x1e5   :  { %v963_v31 = vpop.f32.mrb[23].mxu1 }
 0x1e6   :  { %v512_v32 = vadd.f32 %v961_v39, %v1313_v34  ;;  %v964_v33 = vadd.f32 %v963_v31, %v962_v40  ;;  %1017 = vmatprep.mubr.bf16.mxu0 %v554_v30 }
 0x1e8   :  { %v515_v37 = vadd.f32 %v964_v33, %v1313_v34  ;;  %v544_v38 = vmax.f32 %v512_v32, 0.0 }
 0x1ea   :  { %v545_v41 = vmax.f32 %v515_v37, 0.0  ;;  %v965_v42 = vpop.f32.mrb[24].mxu1 }
 0x1eb   :  { %v966_v43 = vpop.f32.mrb[25].mxu1 }
 0x1ec   :  { %v967_v44 = vadd.f32 %v966_v43, %v965_v42  ;;  %v968_v45 = vpop.f32.mrb[26].mxu1  ;;  %v555_v46 = vpack.c.bf16 %v545_v41, %v544_v38 }
 0x1ed   :  { %v969_v47 = vpop.f32.mrb[27].mxu1 }
 0x1ee   :  { %v520_v48 = vadd.f32 %v967_v44, %v1313_v34  ;;  %v970_v49 = vadd.f32 %v969_v47, %v968_v45  ;;  %1018 = vmatmul.mubr.bf16.gmra.mrb[40].mxu0 %v555_v46 }
 0x1f0   :  { %v523_v50 = vadd.f32 %v970_v49, %v1313_v34  ;;  %v546_v51 = vmax.f32 %v520_v48, 0.0 }
 0x1f2   :  { %v547_v52 = vmax.f32 %v523_v50, 0.0  ;;  %v971_v53 = vpop.f32.mrb[28].mxu1 }
 0x1f3   :  { %v972_v54 = vpop.f32.mrb[29].mxu1 }
 0x1f4   :  { %v973_v55 = vadd.f32 %v972_v54, %v971_v53  ;;  %v974_v56 = vpop.f32.mrb[30].mxu1  ;;  %v556_v57 = vpack.c.bf16 %v547_v52, %v546_v51 }
 0x1f5   :  { %v975_v58 = vpop.f32.mrb[31].mxu1 }
 0x1f6   :  { %v528_v59 = vadd.f32 %v973_v55, %v1313_v34  ;;  %v976_v60 = vadd.f32 %v975_v58, %v974_v56  ;;  %1021 = vmatprep.mubr.bf16.mxu0 %v556_v57  ;;  %v795_v57 = vpop.permute.xlu1 %794 }
 0x1f8   :  { %v531_v61 = vadd.f32 %v976_v60, %v1313_v34  ;;  %v548_v62 = vmax.f32 %v528_v59, 0.0  ;;  %v780_v34 = vld [vmem:[%s1367_s7 + $0x30] sm:$0xff]  ;;  %s861_s7 = sshll.u32 %s1089_s6, 4  ;;  %s862_s7 = int_to_ptr.vmem [resolvable:$true] %s861_s7 }
 0x1f9   :  { %814 = vperm.xlu0 %1027, %v780_v34   ;;  %s1064_s23 = scalar_lea.vmem %s862_s7, 16  ;;  %s1068_s24 = scalar_lea.vmem %s862_s7, 32 }
 0x1fa   :  { %v549_v63 = vmax.f32 %v531_v61, 0.0  ;;  %v800_v58 = vpop.permute.xlu1 %799  ;;  %p1065_p0 = scmp.ne.s32.totalorder %s862_s7, %s1064_s23  ;;  %p1069_p1 = scmp.lt.s32.totalorder %s862_s7, %s862_s7 }
 0x1fb   :  { %p1070_p2 = scmp.lt.s32.totalorder %s1068_s24, %s1064_s23 }
 0x1fc   :  { %v557_v0 = vpack.c.bf16 %v549_v63, %v548_v62 }
 0x1fd   :  { %846 = vperm.xlu0 %1027, %v843_v4   ;;  %p1071_p3 = por %p1070_p2, %p1069_p1 }
 0x1fe   :  { %1022 = vmatmul.mubr.bf16.gmra.mrb[44].mxu0 %v557_v0  ;;  %v810_v59 = vpop.permute.xlu1 %809 }
 0x1ff   :  { %p1072_p4 = pnand %p1071_p3, %p1065_p0 }
 0x202   :  { %v820_v60 = vpop.permute.xlu1 %819 }
 0x250   :  { %v785_v63 = vpop.permute.xlu0 %784 }
 0x254   :  { %v790_v1 = vpop.permute.xlu0 %789 }
 0x2a1   :  { %v1011_v6 = vpop.f32.mrb[32].mxu0 }
 0x2a2   :  { %v663_v7 = vpop.f32.mrb[33].mxu0  ;;  %v672_v13 = vadd.f32 %v1011_v6, %v904_v5 }
 0x2a3   :  { %v664_v8 = vadd.f32 %v904_v5, %v663_v7  ;;  %v1012_v9 = vpop.f32.mrb[34].mxu0  ;;  %v805_v7 = vpop.permute.xlu0 %804 }
 0x2a4   :  { %v666_v10 = vpop.f32.mrb[35].mxu0  ;;  %v728_v15 = vmax.f32 %v672_v13, 0.0  ;;  %v675_v16 = vadd.f32 %v1012_v9, %v904_v5 }
 0x2a5   :  { %v726_v11 = vmax.f32 %v664_v8, 0.0  ;;  %v667_v12 = vadd.f32 %v904_v5, %v666_v10 }
 0x2a6   :  { %v729_v17 = vmax.f32 %v675_v16, 0.0 }
 0x2a7   :  { %742 = vxpose.xlu1.b32.start [1/16] (narrow) %v726_v11, 64  ;;  %v727_v14 = vmax.f32 %v667_v12, 0.0 }
 0x2ab   :  { %743 = vxpose.xlu1.b32.cont [2/16] (narrow) %v727_v14, 64  ;;  %v815_v14 = vpop.permute.xlu0 %814 }
 0x2af   :  { %744 = vxpose.xlu1.b32.cont [3/16] (narrow) %v728_v15, 64 }
 0x2b1   :  { %v1015_v18 = vpop.f32.mrb[36].mxu0 }
 0x2b2   :  { %v679_v19 = vpop.f32.mrb[37].mxu0  ;;  %v688_v25 = vadd.f32 %v1015_v18, %v904_v5 }
 0x2b3   :  { %v680_v20 = vadd.f32 %v904_v5, %v679_v19  ;;  %v1016_v21 = vpop.f32.mrb[38].mxu0  ;;  %745 = vxpose.xlu1.b32.cont [4/16] (narrow) %v729_v17, 64 }
 0x2b4   :  { %v682_v22 = vpop.f32.mrb[39].mxu0  ;;  %v732_v27 = vmax.f32 %v688_v25, 0.0  ;;  %v691_v28 = vadd.f32 %v1016_v21, %v904_v5 }
 0x2b5   :  { %v730_v23 = vmax.f32 %v680_v20, 0.0  ;;  %v683_v24 = vadd.f32 %v904_v5, %v682_v22 }
 0x2b6   :  { %v733_v29 = vmax.f32 %v691_v28, 0.0 }
 0x2b7   :  { %746 = vxpose.xlu1.b32.cont [5/16] (narrow) %v730_v23, 64  ;;  %v731_v26 = vmax.f32 %v683_v24, 0.0 }
 0x2bb   :  { %747 = vxpose.xlu1.b32.cont [6/16] (narrow) %v731_v26, 64 }
 0x2bf   :  { %748 = vxpose.xlu1.b32.cont [7/16] (narrow) %v732_v27, 64  ;;  %v847_v27 = vpop.permute.xlu0 %846 }
 0x2c1   :  { %v1019_v39 = vpop.f32.mrb[40].mxu0 }
 0x2c2   :  { %v695_v40 = vpop.f32.mrb[41].mxu0  ;;  %v704_v38 = vadd.f32 %v1019_v39, %v904_v5 }
 0x2c3   :  { %v696_v30 = vadd.f32 %v904_v5, %v695_v40  ;;  %v1020_v31 = vpop.f32.mrb[42].mxu0  ;;  %749 = vxpose.xlu1.b32.cont [8/16] (narrow) %v733_v29, 64  ;;  %v852_v29 = vrot.slane %v847_v27, %v58_v36 }
 0x2c4   :  { %v698_v32 = vpop.f32.mrb[43].mxu0  ;;  %v736_v42 = vmax.f32 %v704_v38, 0.0  ;;  %v707_v43 = vadd.f32 %v1020_v31, %v904_v5 }
 0x2c5   :  { %v734_v33 = vmax.f32 %v696_v30, 0.0  ;;  %v699_v37 = vadd.f32 %v904_v5, %v698_v32 }
 0x2c6   :  { %v737_v44 = vmax.f32 %v707_v43, 0.0 }
 0x2c7   :  { %750 = vxpose.xlu1.b32.cont [9/16] (narrow) %v734_v33, 64  ;;  %v735_v41 = vmax.f32 %v699_v37, 0.0 }
 0x2cb   :  { %751 = vxpose.xlu1.b32.cont [10/16] (narrow) %v735_v41, 64 }
 0x2cf   :  { %752 = vxpose.xlu1.b32.cont [11/16] (narrow) %v736_v42, 64 }
 0x2d1   :  { %v1023_v45 = vpop.f32.mrb[44].mxu0 }
 0x2d2   :  { %v711_v46 = vpop.f32.mrb[45].mxu0  ;;  %v720_v52 = vadd.f32 %v1023_v45, %v904_v5 }
 0x2d3   :  { %v712_v47 = vadd.f32 %v904_v5, %v711_v46  ;;  %v1024_v48 = vpop.f32.mrb[46].mxu0  ;;  %753 = vxpose.xlu1.b32.cont [12/16] (narrow) %v737_v44, 64 }
 0x2d4   :  { %v714_v49 = vpop.f32.mrb[47].mxu0  ;;  %v740_v54 = vmax.f32 %v720_v52, 0.0  ;;  %v723_v55 = vadd.f32 %v1024_v48, %v904_v5 }
 0x2d5   :  { %v738_v50 = vmax.f32 %v712_v47, 0.0  ;;  %v715_v51 = vadd.f32 %v904_v5, %v714_v49 }
 0x2d6   :  { %v741_v56 = vmax.f32 %v723_v55, 0.0 }
 0x2d7   :  { %754 = vxpose.xlu1.b32.cont [13/16] (narrow) %v738_v50, 64  ;;  %v739_v53 = vmax.f32 %v715_v51, 0.0 }
 0x2db   :  { %755 = vxpose.xlu1.b32.cont [14/16] (narrow) %v739_v53, 64 }
 0x2df   :  { %756 = vxpose.xlu1.b32.cont [15/16] (narrow) %v740_v54, 64 }
 0x2e3   :  { %757 = vxpose.xlu1.b32.end [16/16] (narrow) %v741_v56, 64 }
 0x327   :  { %v758_v61 = vpop.trf.xlu1 }
 0x328   :  { %v822_v4 = vmul.f32 %v785_v63, %v758_v61 }
 0x32b   :  { %v759_v62 = vpop.trf.xlu1 }
 0x32c   :  { %v823_v3 = vmul.f32 %v790_v1, %v759_v62 }
 0x32e   :  { %v830_v8 = vadd.f32 %v823_v3, %v822_v4 }
 0x32f   :  { %v760_v0 = vpop.trf.xlu1 }
 0x330   :  { %v824_v6 = vmul.f32 %v795_v57, %v760_v0 }
 0x332   :  { %v831_v10 = vadd.f32 %v830_v8, %v824_v6 }
 0x333   :  { %v761_v2 = vpop.trf.xlu1 }
 0x334   :  { %v825_v5 = vmul.f32 %v800_v58, %v761_v2 }
 0x336   :  { %v832_v12 = vadd.f32 %v831_v10, %v825_v5 }
 0x337   :  { %v762_v34 = vpop.trf.xlu1 }
 0x338   :  { %v826_v11 = vmul.f32 %v805_v7, %v762_v34 }
 0x33a   :  { %v833_v16 = vadd.f32 %v832_v12, %v826_v11 }
 0x33b   :  { %v763_v9 = vpop.trf.xlu1 }
 0x33c   :  { %v827_v13 = vmul.f32 %v810_v59, %v763_v9 }
 0x33e   :  { %v834_v18 = vadd.f32 %v833_v16, %v827_v13 }
 0x33f   :  { %v764_v15 = vpop.trf.xlu1 }
 0x340   :  { %v828_v17 = vmul.f32 %v815_v14, %v764_v15 }
 0x342   :  { %v835_v20 = vadd.f32 %v834_v18, %v828_v17 }
 0x343   :  { %v765_v19 = vpop.trf.xlu1 }
 0x344   :  { %v829_v21 = vmul.f32 %v820_v60, %v765_v19 }
 0x346   :  { %v836_v22 = vadd.f32 %v835_v20, %v829_v21 }
 0x348   :  { %v837_v23 = vrot.slane %v836_v22, 4 }
 0x34a   :  { %v838_v24 = vadd.f32 %v837_v23, %v836_v22 }
 0x34c   :  { %v839_v25 = vrot.slane %v838_v24, 2 }
 0x34e   :  { %v840_v26 = vadd.f32 %v839_v25, %v838_v24 }
 0x350   :  { %v841_v28 = vrot.slane %v840_v26, 1 }
 0x352   :  { %v842_v39 = vadd.f32 %v841_v28, %v840_v26 }
 0x354   :  { %v853_v40 = vadd.f32 %v852_v29, %v842_v39 }
 0x356   :  { %854 = vst [vmem:[#allocation3] sm:$0x1] %v853_v40 }
 0x357   :  { %1075 = shalt.err (!%p1072_p4)
}
 0x358   :  { %s1076_s2 = scalar_lea.hbm %s1369_s9, 16 }
 0x359   :  { %p1077_p5 = scmp.ne.s32.totalorder %s1369_s9, %s1076_s2  ;;  %p1080_p6 = scmp.lt.u32.totalorder %s1076_s2, %s1369_s9 }
 0x35b   :  { %p1082_p7 = pnand %p1080_p6, %p1077_p5 }
 0x35d   :  { %1085 = shalt.err (!%p1082_p7)
}
 0x35e   :  { %864 = dma.vmem_to_hbm [thread:$0]  %s862_s7, 16, %s1369_s9, [#allocation4]  }
 0x35f   :  { %1086 = dma.done.wait [#allocation4], 16  }
 0x360   :  { %1087 = vsyncadd [#allocation4], 4294967280 }
 0x361   :  { %868 = vsyncpa [#allocation4], 1 }

</bundles_post_ra>
